<compile_context>
chip_gen: v6e
topology: v6e:2x2x1
jax: 0.10.0
libtpu: 0.0.40
codegen_flags: <defaults>
</compile_context>

<pallas_src>
import jax
import jax.numpy as jnp
from jax.experimental import pallas as pl
from jax.experimental.pallas import tpu as pltpu

_LANE = 128
_MIB = 1024 * 1024


def _vmem_capacity_bytes():
    """Physical VMEM per TensorCore.  Narrow query with a conservative
    default (v7x: 64 MiB).  Does not guard any kernel compile path."""
    try:
        return int(pltpu.get_tpu_info().vmem_capacity_bytes)
    except Exception:  # capacity query only
        return 64 * _MIB


def _invariant_block_kwargs():
    """pipeline_mode=pl.Buffered(1) for grid-invariant blocks: they are DMA'd
    once, so double-buffering them only wastes VMEM.  Narrow constructor
    probe (TypeError on unsupported kwarg), no broad fallback."""
    if not hasattr(pl, "Buffered"):
        return {}
    try:
        pl.BlockSpec((8, _LANE), lambda i: (0, 0), pipeline_mode=pl.Buffered(1))
    except TypeError:
        return {}
    return {"pipeline_mode": pl.Buffered(1)}


_INVARIANT_KW = _invariant_block_kwargs()


def _hidden_tile_candidates(hidden):
    """Largest-first tile sizes that exactly divide `hidden` (no garbage in
    the reduction): the full dim, then 128-multiples that divide it."""
    cands = [hidden]
    for c in (8192, 4096, 2048, 1024, 512, 256, 128):
        if c < hidden and hidden % c == 0:
            cands.append(c)
    return cands


def _step_vmem_bytes(n, th, tm, xbytes, obytes, cbytes, wbuf):
    weights = wbuf * 2 * n * th * cbytes          # w1 (n,th) + w2 (th,n) blocks
    biases = wbuf * th * 4 + n * 4                # b1 block(s) + b2
    x_tiles = 2 * tm * n * xbytes                 # double-buffered x tile
    o_tiles = 2 * tm * n * obytes                 # double-buffered out tile
    acc = tm * n * 4                              # f32 accumulator scratch
    hid = tm * th * (4 + cbytes)                  # live f32 hidden + bf16 copy
    return weights + biases + x_tiles + o_tiles + acc + hid


def _ffn_kernel(x_ref, w1_ref, b1_ref, w2_ref, b2_ref, o_ref, acc_ref):
    # x_ref : (tm, n)  original dtype      w1_ref: (n, th)  bf16
    # b1_ref: (1, th)  f32                 w2_ref: (th, n)  bf16
    # b2_ref: (1, n)   f32                 o_ref : (tm, n)  out dtype
    # acc_ref: (tm, n) f32 scratch, resident across the hidden (k) axis.
    k = pl.program_id(1)

    @pl.when(k == 0)
    def _():
        acc_ref[...] = jnp.zeros_like(acc_ref)

    xc = x_ref[...].astype(w1_ref.dtype)                 # in-kernel cast (VPU)
    h = jnp.dot(xc, w1_ref[...], preferred_element_type=jnp.float32)
    h = jnp.maximum(h + b1_ref[...], 0.0)                # bias + ReLU in f32
    acc_ref[...] += jnp.dot(h.astype(w2_ref.dtype), w2_ref[...],
                            preferred_element_type=jnp.float32)

    @pl.when(k == pl.num_programs(1) - 1)
    def _():
        o_ref[...] = (acc_ref[...] + b2_ref[...]).astype(o_ref.dtype)


def feed_forward(x, w1, b1, w2, b2, *, tile_m=512, compute_dtype=jnp.bfloat16):
    """relu(x @ w1 + b1) @ w2 + b2  (dropout = eval-mode identity).

    x: (..., n_embd); w1: (n_embd, 4*n_embd); w2: (4*n_embd, n_embd).
    Note: MXU operands are bf16 with f32 accumulation (bf16-level error vs an
    f32 reference).
    """
    orig_shape = x.shape
    out_dtype = x.dtype
    n_embd = orig_shape[-1]
    hidden = w1.shape[1]

    x2d = x.reshape(-1, n_embd)        # no wrapper pad/cast of the activation
    m = x2d.shape[0]

    w1c = w1.astype(compute_dtype)     # one-time weight cast for the MXU
    w2c = w2.astype(compute_dtype)
    b1r = b1.reshape(1, hidden).astype(jnp.float32)
    b2r = b2.reshape(1, n_embd).astype(jnp.float32)

    xbytes = jnp.dtype(x.dtype).itemsize
    obytes = jnp.dtype(out_dtype).itemsize
    cbytes = jnp.dtype(compute_dtype).itemsize

    # --- M tile: default 512; clamp to M (full-dim exception) or multiple of 8.
    tm = int(min(tile_m, m))
    if tm < m:
        tm = max(8, (tm // 8) * 8)

    # --- Hidden tile: largest exact divisor whose per-step footprint fits a
    # budget derived from the real device VMEM capacity.
    capacity = _vmem_capacity_bytes()
    budget = int(0.7 * capacity)
    single_buf = bool(_INVARIANT_KW)

    cands = _hidden_tile_candidates(hidden)
    th = None
    for cand in cands:
        wbuf = 1 if (cand == hidden and single_buf) else 2
        if _step_vmem_bytes(n_embd, cand, tm, xbytes, obytes, cbytes, wbuf) <= budget:
            th = cand
            break
    if th is None:
        # Best effort for extreme shapes: smallest hidden tile, shrink tm.
        th = cands[-1]
        wbuf = 1 if (th == hidden and single_buf) else 2
        while (tm > 8 and
               _step_vmem_bytes(n_embd, th, tm, xbytes, obytes, cbytes, wbuf) > budget):
            new_tm = max(8, (tm // 2 // 8) * 8)
            if new_tm == tm:
                break
            tm = new_tm

    n_k = hidden // th
    n_i = pl.cdiv(m, tm)
    wbuf = 1 if (n_k == 1 and single_buf) else 2
    footprint = _step_vmem_bytes(n_embd, th, tm, xbytes, obytes, cbytes, wbuf)
    vmem_limit = int(min(capacity, max(32 * _MIB, int(1.25 * footprint))))

    # Grid-invariant blocks -> single buffer; streamed weight blocks keep the
    # default double buffering for pipelining across the reduction axis.
    w_kw = _INVARIANT_KW if n_k == 1 else {}

    in_specs = [
        pl.BlockSpec((tm, n_embd), lambda i, k: (i, 0)),                    # x
        pl.BlockSpec((n_embd, th), lambda i, k: (0, k), **w_kw),            # w1
        pl.BlockSpec((1, th),      lambda i, k: (0, k), **w_kw),            # b1
        pl.BlockSpec((th, n_embd), lambda i, k: (k, 0), **w_kw),            # w2
        pl.BlockSpec((1, n_embd),  lambda i, k: (0, 0), **_INVARIANT_KW),   # b2
    ]
    out_specs = pl.BlockSpec((tm, n_embd), lambda i, k: (i, 0))

    weight_passes = n_i if n_k > 1 else 1   # streamed weights re-read per M tile
    cost = pl.CostEstimate(
        flops=4 * m * n_embd * hidden,      # two matmuls: 2*M*K*N each
        transcendentals=0,
        bytes_accessed=(m * n_embd * (xbytes + obytes)
                        + weight_passes * 2 * n_embd * hidden * cbytes
                        + (hidden + n_embd) * 4),
    )

    out = pl.pallas_call(
        _ffn_kernel,
        out_shape=jax.ShapeDtypeStruct((m, n_embd), out_dtype),
        grid_spec=pltpu.PrefetchScalarGridSpec(
            num_scalar_prefetch=0,
            grid=(n_i, n_k),                 # M parallel, hidden reduction last
            in_specs=in_specs,
            out_specs=out_specs,
            scratch_shapes=[pltpu.VMEM((tm, n_embd), jnp.float32)],
        ),
        compiler_params=pltpu.CompilerParams(
            dimension_semantics=("parallel", "arbitrary"),
            vmem_limit_bytes=vmem_limit,
        ),
        cost_estimate=cost,
    )(x2d, w1c, b1r, w2c, b2r)

    return out.reshape(orig_shape)


if __name__ == "__main__":
    # Small shapes consistent with the module: batch=2, seq=8, n_embd=32.
    batch, seq, n_embd = 2, 8, 32
    hidden = 4 * n_embd

    key = jax.random.PRNGKey(0)
    kx, kw1, kb1, kw2, kb2 = jax.random.split(key, 5)

    x = jax.random.normal(kx, (batch, seq, n_embd), dtype=jnp.float32)

    # Deterministic parameter init (matching nn.Linear shapes/bounds).
    bound1 = 1.0 / (n_embd ** 0.5)
    w1 = jax.random.uniform(kw1, (n_embd, hidden), minval=-bound1, maxval=bound1,
                            dtype=jnp.float32)
    b1 = jax.random.uniform(kb1, (hidden,), minval=-bound1, maxval=bound1,
                            dtype=jnp.float32)
    bound2 = 1.0 / (hidden ** 0.5)
    w2 = jax.random.uniform(kw2, (hidden, n_embd), minval=-bound2, maxval=bound2,
                            dtype=jnp.float32)
    b2 = jax.random.uniform(kb2, (n_embd,), minval=-bound2, maxval=bound2,
                            dtype=jnp.float32)

    y = feed_forward(x, w1, b1, w2, b2)
    y = jax.block_until_ready(y)

    # f32 reference; kernel uses bf16 MXU operands with f32 accumulation,
    # so compare with bf16-level tolerance.
    h_ref = jnp.maximum(x.reshape(-1, n_embd) @ w1 + b1, 0.0)
    y_ref = (h_ref @ w2 + b2).reshape(x.shape)
    assert y.shape == x.shape and y.dtype == x.dtype
    assert jnp.allclose(y, y_ref, atol=3e-2, rtol=3e-2), "mismatch vs reference"

    print("KERNEL_OK")
</pallas_src>

<mosaic_0001>
module attributes {stable_mosaic.version = 11 : i64} {
  func.func @_ffn_kernel(%arg0: i32, %arg1: i32, %arg2: memref<16x32xf32, #tpu.memory_space<vmem>>, %arg3: memref<32x128xbf16, #tpu.memory_space<vmem>>, %arg4: memref<1x128xf32, #tpu.memory_space<vmem>>, %arg5: memref<128x32xbf16, #tpu.memory_space<vmem>>, %arg6: memref<1x32xf32, #tpu.memory_space<vmem>>, %arg7: memref<16x32xf32, #tpu.memory_space<vmem>>, %arg8: memref<16x32xf32, #tpu.memory_space<vmem>>) attributes {dimension_semantics = [#tpu.dimension_semantics<parallel>, #tpu.dimension_semantics<arbitrary>], iteration_bounds = array<i64: 1, 1>, scalar_prefetch = 0 : i64, scratch_operands = 1 : i64, tpu.core_type = #tpu.core_type<tc>, window_params = [{transform_indices = @transform_0, window_bounds = array<i64: 16, 32>}, {pipeline_mode = #tpu.pipeline_mode<synchronous>, transform_indices = @transform_1, window_bounds = array<i64: 32, 128>}, {pipeline_mode = #tpu.pipeline_mode<synchronous>, transform_indices = @transform_2, window_bounds = array<i64: 1, 128>}, {pipeline_mode = #tpu.pipeline_mode<synchronous>, transform_indices = @transform_3, window_bounds = array<i64: 128, 32>}, {pipeline_mode = #tpu.pipeline_mode<synchronous>, transform_indices = @transform_4, window_bounds = array<i64: 1, 32>}, {transform_indices = @transform_5, window_bounds = array<i64: 16, 32>}]} {
    %c0_i32 = arith.constant 0 : i32
    %0 = arith.cmpi eq, %arg1, %c0_i32 : i32
    %1 = arith.extui %0 : i1 to i32
    %c0_i32_0 = arith.constant 0 : i32
    %2 = arith.cmpi ne, %1, %c0_i32_0 : i32
    scf.if %2 {
      %cst_16 = arith.constant 0.000000e+00 : f32
      %21 = vector.broadcast %cst_16 : f32 to vector<16x32xf32>
      %c0_17 = arith.constant 0 : index
      %c0_18 = arith.constant 0 : index
      %22 = vector.load %arg8[%c0_17, %c0_18] : memref<16x32xf32, #tpu.memory_space<vmem>>, vector<16x32xf32>
      tpu.vector_store %arg8[%c0_17, %c0_18], %21 {strides = array<i32>} : memref<16x32xf32, #tpu.memory_space<vmem>>, vector<16x32xf32>,
    } else {
    }
    %c0 = arith.constant 0 : index
    %c0_1 = arith.constant 0 : index
    %3 = vector.load %arg2[%c0, %c0_1] : memref<16x32xf32, #tpu.memory_space<vmem>>, vector<16x32xf32>
    %4 = arith.truncf %3 : vector<16x32xf32> to vector<16x32xbf16>
    %c0_2 = arith.constant 0 : index
    %c0_3 = arith.constant 0 : index
    %5 = vector.load %arg3[%c0_2, %c0_3] : memref<32x128xbf16, #tpu.memory_space<vmem>>, vector<32x128xbf16>
    %cst = arith.constant dense<0.000000e+00> : vector<16x128xf32>
    %6 = tpu.matmul %4, %5, %cst {dimension_numbers = #tpu.dot_dimension_numbers<[1], [0], [0], [1], [0, 0, 1, 1], [], []>} : vector<16x32xbf16>, vector<32x128xbf16>, vector<16x128xf32> -> vector<16x128xf32>
    %c0_4 = arith.constant 0 : index
    %c0_5 = arith.constant 0 : index
    %7 = vector.load %arg4[%c0_4, %c0_5] : memref<1x128xf32, #tpu.memory_space<vmem>>, vector<1x128xf32>
    %8 = vector.broadcast %7 : vector<1x128xf32> to vector<16x128xf32>
    %9 = arith.addf %6, %8 : vector<16x128xf32>
    %cst_6 = arith.constant 0.000000e+00 : f32
    %10 = vector.broadcast %cst_6 : f32 to vector<16x128xf32>
    %11 = arith.maximumf %9, %10 : vector<16x128xf32>
    %c0_7 = arith.constant 0 : index
    %c0_8 = arith.constant 0 : index
    %12 = vector.load %arg8[%c0_7, %c0_8] : memref<16x32xf32, #tpu.memory_space<vmem>>, vector<16x32xf32>
    %13 = arith.truncf %11 : vector<16x128xf32> to vector<16x128xbf16>
    %c0_9 = arith.constant 0 : index
    %c0_10 = arith.constant 0 : index
    %14 = vector.load %arg5[%c0_9, %c0_10] : memref<128x32xbf16, #tpu.memory_space<vmem>>, vector<128x32xbf16>
    %cst_11 = arith.constant dense<0.000000e+00> : vector<16x32xf32>
    %15 = tpu.matmul %13, %14, %cst_11 {dimension_numbers = #tpu.dot_dimension_numbers<[1], [0], [0], [1], [0, 0, 1, 1], [], []>} : vector<16x128xbf16>, vector<128x32xbf16>, vector<16x32xf32> -> vector<16x32xf32>
    %16 = arith.addf %12, %15 : vector<16x32xf32>
    %c0_12 = arith.constant 0 : index
    %c0_13 = arith.constant 0 : index
    %17 = vector.load %arg8[%c0_12, %c0_13] : memref<16x32xf32, #tpu.memory_space<vmem>>, vector<16x32xf32>
    tpu.vector_store %arg8[%c0_12, %c0_13], %16 {strides = array<i32>} : memref<16x32xf32, #tpu.memory_space<vmem>>, vector<16x32xf32>,
    %c0_i32_14 = arith.constant 0 : i32
    %18 = arith.cmpi eq, %arg1, %c0_i32_14 : i32
    %19 = arith.extui %18 : i1 to i32
    %c0_i32_15 = arith.constant 0 : i32
    %20 = arith.cmpi ne, %19, %c0_i32_15 : i32
    scf.if %20 {
      %c0_16 = arith.constant 0 : index
      %c0_17 = arith.constant 0 : index
      %21 = vector.load %arg8[%c0_16, %c0_17] : memref<16x32xf32, #tpu.memory_space<vmem>>, vector<16x32xf32>
      %c0_18 = arith.constant 0 : index
      %c0_19 = arith.constant 0 : index
      %22 = vector.load %arg6[%c0_18, %c0_19] : memref<1x32xf32, #tpu.memory_space<vmem>>, vector<1x32xf32>
      %23 = vector.broadcast %22 : vector<1x32xf32> to vector<16x32xf32>
      %24 = arith.addf %21, %23 : vector<16x32xf32>
      %c0_20 = arith.constant 0 : index
      %c0_21 = arith.constant 0 : index
      %25 = vector.load %arg7[%c0_20, %c0_21] : memref<16x32xf32, #tpu.memory_space<vmem>>, vector<16x32xf32>
      tpu.vector_store %arg7[%c0_20, %c0_21], %24 {strides = array<i32>} : memref<16x32xf32, #tpu.memory_space<vmem>>, vector<16x32xf32>,
    } else {
    }
    return
  }
  func.func @transform_0(%arg0: i32, %arg1: i32) -> (i32, i32) {
    %c0_i32 = arith.constant 0 : i32
    %c0_i32_0 = arith.constant 0 : i32
    return %arg0, %c0_i32 : i32, i32
  }
  func.func @transform_1(%arg0: i32, %arg1: i32) -> (i32, i32) {
    %c0_i32 = arith.constant 0 : i32
    %c0_i32_0 = arith.constant 0 : i32
    return %c0_i32, %arg1 : i32, i32
  }
  func.func @transform_2(%arg0: i32, %arg1: i32) -> (i32, i32) {
    %c0_i32 = arith.constant 0 : i32
    %c0_i32_0 = arith.constant 0 : i32
    return %c0_i32, %arg1 : i32, i32
  }
  func.func @transform_3(%arg0: i32, %arg1: i32) -> (i32, i32) {
    %c0_i32 = arith.constant 0 : i32
    %c0_i32_0 = arith.constant 0 : i32
    return %arg1, %c0_i32 : i32, i32
  }
  func.func @transform_4(%arg0: i32, %arg1: i32) -> (i32, i32) {
    %c0_i32 = arith.constant 0 : i32
    %c0_i32_0 = arith.constant 0 : i32
    %c0_i32_1 = arith.constant 0 : i32
    return %c0_i32, %c0_i32_0 : i32, i32
  }
  func.func @transform_5(%arg0: i32, %arg1: i32) -> (i32, i32) {
    %c0_i32 = arith.constant 0 : i32
    %c0_i32_0 = arith.constant 0 : i32
    return %arg0, %c0_i32 : i32, i32
  }
}

</mosaic_0001>

<bundles_post_ra>
// kernel: tpu_custom_call.1
= control target key start
LH: loop header
LB: loop body
LE: loop exit
PB: predicated region body
PF: predicated region fallthrough
CT: control target
= control target key end

     0   :  { %v336_v1 = vmov 0.0   ;;  %vm337_vm0 = vmmov 0   ;;  %vm26_vm1 = vcmask 261120   ;;  %s423_s0 = inlined_call_operand.vmem [shape: f32[16,32], index: 0, kind: input, shape index: {}]   ;;  %s424_s1 = inlined_call_operand.vmem [shape: bf16[32,128], index: 1, kind: input, shape index: {}]   ;;  %s425_s2 = inlined_call_operand.vmem [shape: f32[1,128], index: 2, kind: input, shape index: {}]   ;;  %s426_s3 = inlined_call_operand.vmem [shape: bf16[128,32], index: 3, kind: input, shape index: {}]   ;;  %s427_s4 = inlined_call_operand.vmem [shape: f32[1,32], index: 4, kind: input, shape index: {}]   ;;  %s428_s5 = inlined_call_operand.hbm [shape: f32[16,32], index: 5, kind: output, shape index: {}]  }
   0x1   :  { %v304_v0 = vld [vmem:[%s424_s1 + $0x8] sm:$0xff]   ;;  %271 = vmatprep.subr.bf16.mxu0 %v336_v1  ;;  %v305_v2 = vld [vmem:[%s424_s1] sm:$0xff]   ;;  %279 = vmatprep.subr.bf16.mxu1 %v336_v1  ;;  %27 = vst.msk [vmem:[#allocation2] sm:$0xff] %vm26_vm1, %v336_v1  ;;  %28 = vst.msk [vmem:[#allocation2 + $0x8] sm:$0xff] %vm26_vm1, %v336_v1 }
   0x2   :  { %272 = vmatpush3.bf16.msra.mxu0 %v304_v0  ;;  %275 = vmatprep.mubr.msk.bf16.mxu0 %vm337_vm0, %v336_v1  ;;  %v29_v3 = vld [vmem:[%s423_s0] sm:$0xff]  ;;  %v30_v4 = vld [vmem:[%s423_s0 + $0x8] sm:$0xff]  ;;  %v306_v5 = vld [vmem:[%s426_s3 + $0x38] sm:$0xff]  }
   0x3   :  { %273 = vmatprep.subr.bf16.mxu0 %v336_v1  ;;  %295 = vmatprep.mubr.msk.bf16.mxu1 %vm337_vm0, %v336_v1  ;;  %v31_v6 = vpack.c.bf16 %v30_v4, %v29_v3  ;;  %v307_v7 = vld [vmem:[%s426_s3 + $0x30] sm:$0xff]   ;;  %v308_v8 = vld [vmem:[%s426_s3 + $0x28] sm:$0xff]  }
   0x4   :  { %280 = vmatpush3.bf16.msra.mxu1 %v306_v5 }
   0x5   :  { %281 = vmatprep.subr.bf16.mxu1 %v336_v1 }
   0x6   :  { %274 = vmatpush3.bf16.msra.mxu0 %v305_v2 }
   0x8   :  { %282 = vmatpush3.bf16.msra.mxu1 %v307_v7 }
   0x9   :  { %276 = vmatmul.mubr.msk.bf16.vlgmr.msra.gmra.mxu0 %vm26_vm1, %v31_v6  ;;  %283 = vmatprep.subr.bf16.mxu1 %v336_v1 }
   0xa   :  { %10 = vsyncpa [#allocation4], 0  ;;  %v309_v9 = vld [vmem:[%s426_s3 + $0x20] sm:$0xff]   ;;  %v310_v10 = vld [vmem:[%s426_s3 + $0x18] sm:$0xff]   ;;  %s338_s17 = smov [#allocation3]  }
   0xb   :  { %v311_v11 = vld [vmem:[%s426_s3 + $0x10] sm:$0xff]   ;;  %v312_v12 = vld [vmem:[%s426_s3 + $0x8] sm:$0xff]   ;;  %v313_v13 = vld [vmem:[%s426_s3] sm:$0xff]   ;;  %s235_s18 = sshll.u32 %s338_s17, 4  ;;  %s236_s18 = int_to_ptr.vmem [resolvable:$true] %s235_s18 }
   0xc   :  { %284 = vmatpush3.bf16.msra.mxu1 %v308_v8  ;;  %v246_v14 = vld [vmem:[%s425_s2] ss:$0 sm:$0xff]  ;;  %v103_v28 = vld [vmem:[#allocation2 + $0x8] sm:$0xff]  ;;  %s314_s19 = scalar_lea.vmem %s236_s18, 256  ;;  %p319_p1 = scmp.lt.s32.totalorder %s236_s18, %s236_s18 }
   0xd   :  { %285 = vmatprep.subr.bf16.mxu1 %v336_v1  ;;  %v102_v24 = vld [vmem:[#allocation2] sm:$0xff]  ;;  %p315_p0 = scmp.ne.s32.totalorder %s236_s18, %s314_s19  ;;  %p320_p2 = scmp.lt.s32.totalorder %s314_s19, %s314_s19 }
   0xe   :  { %v258_v32 = vld [vmem:[%s427_s4] ss:$0 sm:$0xff] }
   0xf   :  { %p321_p3 = por %p320_p2, %p319_p1 }
  0x10   :  { %286 = vmatpush3.bf16.msra.mxu1 %v309_v9 }
  0x11   :  { %287 = vmatprep.subr.bf16.mxu1 %v336_v1  ;;  %p322_p4 = pnand %p321_p3, %p315_p0 }
  0x14   :  { %288 = vmatpush3.bf16.msra.mxu1 %v310_v10 }
  0x15   :  { %289 = vmatprep.subr.bf16.mxu1 %v336_v1 }
  0x18   :  { %290 = vmatpush3.bf16.msra.mxu1 %v311_v11 }
  0x19   :  { %291 = vmatprep.subr.bf16.mxu1 %v336_v1 }
  0x1c   :  { %292 = vmatpush3.bf16.msra.mxu1 %v312_v12 }
  0x1d   :  { %293 = vmatprep.subr.bf16.mxu1 %v336_v1 }
  0x20   :  { %294 = vmatpush3.bf16.msra.mxu1 %v313_v13 }
  0xc9   :  { %v93_v15 = vpop.f32.mrf.mxu0 }
  0xca   :  { %v94_v17 = vadd.f32 %v246_v14, %v93_v15 }
  0xcb   :  { %v277_v16 = vpop.f32.mrf.mxu0 }
  0xcc   :  { %v100_v21 = vmax.f32 %v94_v17, 0.0 }
  0xcd   :  { %v96_v18 = vpop.f32.mrf.mxu0 }
  0xce   :  { %v97_v19 = vadd.f32 %v246_v14, %v96_v18 }
  0xcf   :  { %v278_v20 = vpop.f32.mrf.mxu0 }
  0xd0   :  { %v101_v22 = vmax.f32 %v97_v19, 0.0 }
  0xd2   :  { %v104_v23 = vpack.c.bf16 %v101_v22, %v100_v21 }
  0xd4   :  { %296 = vmatmul.mubr.bf16.vlgmr.msra.gmra.mxu1 %v104_v23 }
 0x194   :  { %v203_v25 = vpop.f32.mrf.mxu1 }
 0x195   :  { %v210_v26 = vadd.f32 %v203_v25, %v102_v24 }
 0x196   :  { %v297_v27 = vpop.f32.mrf.mxu1 }
 0x197   :  { %212 = vst.msk [vmem:[#allocation2] sm:$0xff] %vm26_vm1, %v210_v26 }
 0x198   :  { %v206_v29 = vpop.f32.mrf.mxu1 }
 0x199   :  { %v211_v30 = vadd.f32 %v206_v29, %v103_v28 }
 0x19a   :  { %v298_v31 = vpop.f32.mrf.mxu1 }
 0x19b   :  { %213 = vst.msk [vmem:[#allocation2 + $0x8] sm:$0xff] %vm26_vm1, %v211_v30 }
 0x19e   :  { %v217_v33 = vld [vmem:[#allocation2] sm:$0xff] }
 0x19f   :  { %v226_v34 = vadd.f32 %v258_v32, %v217_v33 }
 0x1a1   :  { %228 = vst.msk [vmem:[#allocation3] sm:$0xff] %vm26_vm1, %v226_v34 }
 0x1a2   :  { %v218_v35 = vld [vmem:[#allocation2 + $0x8] sm:$0xff] }
 0x1a3   :  { %v227_v36 = vadd.f32 %v258_v32, %v218_v35 }
 0x1a5   :  { %229 = vst.msk [vmem:[#allocation3 + $0x8] sm:$0xff] %vm26_vm1, %v227_v36 }
 0x1a6   :  { %325 = shalt.err (!%p322_p4)
}
 0x1a7   :  { %s339_s20 = smov 128   ;;  %s340_s4 = smov 8  }
 0x1a8   :  { %241 = dma.vmem_to_hbm [thread:$0]  %s236_s18, 256, %s428_s5, [#allocation4], %s339_s20, %s339_s20, %s340_s4  }
 0x1a9   :  { %334 = dma.done.wait [#allocation4], 256  }
 0x1aa   :  { %335 = vsyncadd [#allocation4], 4294967040 }
 0x1ab   :  { %245 = vsyncpa [#allocation4], 1 }

</bundles_post_ra>
